<compile_context>
chip_gen: v7x
topology: tpu7x:2x2x1
jax: 0.10.0
libtpu: 0.0.40
codegen_flags: <defaults>
</compile_context>

<pallas_src>
import functools

import jax
import jax.numpy as jnp
from jax.experimental import pallas as pl
from jax.experimental.pallas import tpu as pltpu


def _round_up(x, m):
    return (x + m - 1) // m * m


def _chunk_sumsq_kernel(chunks_ref, csum_ref):
    # chunks_ref: (1, tile_n, hop) f32  ->  csum_ref: (1, tile_n) f32
    x = chunks_ref[...]
    # Lane-axis reduce; the XLU work hides under the block DMA on v5e/v6e and
    # is borderline on v7x.
    # TODO(synk): if a v7x bundle dump shows the XLU slot binding, switch the
    # reduce to an MXU matvec (x*x @ ones((hop, 1))) -- the MXU is idle here.
    csum_ref[...] = jnp.sum(x * x, axis=-1)


def _chunk_sumsq(chunks_2d, *, max_block_bytes):
    """Per-chunk sum of squares of an (N, hop) f32 array via one pallas_call."""
    n, hop = chunks_2d.shape
    row_bytes = hop * 4

    # Per-generation VMEM budget (v5e/v6e: 128 MiB, v7x: 64 MiB).
    try:
        vmem_cap = int(pltpu.get_tpu_info().vmem_capacity_bytes)
    except Exception:
        vmem_cap = 64 * 1024 * 1024                     # v7x-conservative fallback
    target = min(int(max_block_bytes), max(vmem_cap // 8, 1 << 20))

    if n < 256 or n * row_bytes <= target:
        # Whole problem fits one block: single grid step, blocks == full dims.
        tile_n, num_tiles = n, 1
    else:
        # Largest 128-aligned tile within the byte budget ...
        tile_n = max(128, (target // row_bytes) // 128 * 128)
        # ... but keep >= 2 (roughly even) grid steps so the "parallel" axis
        # can split across v7x's two TensorCores.
        tile_n = min(tile_n, _round_up(pl.cdiv(n, 2), 128))
        if tile_n >= n:
            tile_n, num_tiles = n, 1
        else:
            num_tiles = pl.cdiv(n, tile_n)
    n_pad = num_tiles * tile_n                          # partial last tile -> sliced off

    block_bytes = tile_n * row_bytes
    needed = 2 * block_bytes + 2 * tile_n * 4 + (1 << 20)   # dbl-buffered in + out
    vmem_limit = int(min(vmem_cap, max(needed + (4 << 20), 32 << 20)))

    chunks_3d = chunks_2d.reshape(1, n, hop)            # metadata-only
    csum = pl.pallas_call(
        _chunk_sumsq_kernel,
        out_shape=jax.ShapeDtypeStruct((1, n_pad), jnp.float32),
        grid=(num_tiles,),
        in_specs=[pl.BlockSpec((1, tile_n, hop), lambda t: (0, t, 0))],
        out_specs=pl.BlockSpec((1, tile_n), lambda t: (0, t)),
        compiler_params=pltpu.CompilerParams(
            dimension_semantics=("parallel",),
            vmem_limit_bytes=vmem_limit),
    )(chunks_3d)
    return csum[0, :n]


@functools.partial(jax.jit,
                   static_argnames=("n_fft", "hop_length", "max_block_bytes"))
def engry_encoder_forward(signal, n_fft=1024, hop_length=256,
                          max_block_bytes=8 * 1024 * 1024):
    """JAX/Pallas equivalent of EngryEncoder.forward.

    signal: (B, T) or (T,) float32
    returns: (B, num_frames - 1, 1) float32
    """
    if signal.ndim == 1:
        signal = signal[None, :]
    if n_fft % hop_length != 0:
        # TODO(synk): hop_length not dividing n_fft needs an overlapping-frame
        # (halo) path; the module's defaults (1024, 256) divide evenly.
        raise NotImplementedError("hop_length must divide n_fft")

    B, T = signal.shape
    hop = hop_length
    pad = n_fft // 2
    r = n_fft // hop
    if T <= pad:
        raise ValueError("signal too short for reflect padding (need T > n_fft // 2)")

    x = signal.astype(jnp.float32)
    t_pad = T + 2 * pad
    num_keep = (t_pad - n_fft) // hop            # torch drops the last frame
    if num_keep < 1:
        raise ValueError("signal too short: no frames remain after dropping the last one")
    c = num_keep + r - 1                         # hop-sized chunks feeding the frame sums

    if pad % hop == 0:
        # ---- streaming fast path: kernel reads the original signal buffer ----
        P = pad // hop                           # left-edge chunks (mirrored data)
        F = T // hop                             # fully-interior chunks
        q = c - P - F                            # right-edge chunks (= P - 1)
        assert P >= 1 and q >= 0 and F >= 1

        # Interior chunk sums: free reshape of the signal into (B*F, hop) rows.
        # TODO(synk): when T % hop != 0 the trim below costs one extra ~T copy.
        interior = x[:, :F * hop].reshape(B * F, hop)
        interior_csum = _chunk_sumsq(
            interior, max_block_bytes=max_block_bytes).reshape(B, F)

        # Edge chunk sums: only ~n_fft mirrored samples per side; tiny jnp.
        left = x[:, 1:pad + 1][:, ::-1]                                   # (B, pad)
        left_csum = jnp.sum((left * left).reshape(B, P, hop), axis=-1)    # (B, P)
        if q > 0:
            pos = F * hop + jnp.arange(q * hop)
            idx = jnp.where(pos < T, pos, 2 * T - 2 - pos)                # right reflect
            right = jnp.take(x, idx, axis=1)                              # (B, q*hop)
            right_csum = jnp.sum((right * right).reshape(B, q, hop), axis=-1)
            csum = jnp.concatenate([left_csum, interior_csum, right_csum], axis=1)
        else:
            csum = jnp.concatenate([left_csum, interior_csum], axis=1)
    else:
        # ---- general path (pad % hop != 0): materialize the reflect pad ----
        # TODO(synk): this keeps one ~T padded copy; the module defaults avoid it.
        xp = jnp.pad(x, ((0, 0), (pad, pad)), mode="reflect")
        chunks = xp[:, :c * hop].reshape(B * c, hop)
        csum = _chunk_sumsq(chunks, max_block_bytes=max_block_bytes).reshape(B, c)

    # Frame RMS energy: r shifted adds + scale + sqrt on hop-times-less data
    # (plain jnp; a second kernel launch is not worth it at this size).
    acc = csum[:, 0:num_keep]
    for j in range(1, r):                         # static unroll (r - 1 adds)
        acc = acc + csum[:, j:j + num_keep]
    energy = jnp.sqrt(acc * (1.0 / n_fft))
    return energy[:, :, None]                     # (B, F, 1), metadata-only reshape


def _reference(signal, n_fft, hop_length):
    """Pure-JAX mirror of the PyTorch forward (materialized-frame gather)."""
    pad = n_fft // 2
    x = jnp.pad(signal.astype(jnp.float32), ((0, 0), (pad, pad)), mode="reflect")
    num_frames = (x.shape[-1] - n_fft) // hop_length + 1
    idx = (jnp.arange(num_frames)[:, None] * hop_length
           + jnp.arange(n_fft)[None, :])                 # (num_frames, n_fft)
    frames = x[:, idx][:, :-1, :]                        # (B, F, n_fft)
    return jnp.sqrt(jnp.mean(frames ** 2, axis=-1, keepdims=True))


if __name__ == "__main__":
    key = jax.random.PRNGKey(0)
    k1, k2, k3, k4 = jax.random.split(key, 4)

    def _check(signal, n_fft, hop_length, **kw):
        out = jax.block_until_ready(
            engry_encoder_forward(signal, n_fft=n_fft, hop_length=hop_length, **kw))
        ref = _reference(signal, n_fft, hop_length)
        assert out.shape == ref.shape, (out.shape, ref.shape)
        assert jnp.allclose(out, ref, atol=1e-5, rtol=1e-5), \
            float(jnp.max(jnp.abs(out - ref)))

    # 1) Small module-consistent config (hop < 128; single-tile path).
    #    TODO(synk): hop < 128 wastes lanes (16 of 128 used per row); only the
    #    non-default small-hop configs are affected.
    _check(jax.random.normal(k1, (2, 256), dtype=jnp.float32), 64, 16)

    # 2) Module defaults (n_fft=1024, hop=256) on a short signal
    #    (lane-dense hop=256 chunk rows, single-tile path).
    _check(jax.random.normal(k2, (2, 4096), dtype=jnp.float32), 1024, 256)

    # 3) Module defaults with a small block budget to force the production
    #    multi-tile grid, including a partial last tile.
    _check(jax.random.normal(k3, (2, 76800), dtype=jnp.float32), 1024, 256,
           max_block_bytes=128 * 1024)

    # 4) pad % hop != 0 -> general (padded-copy) path.
    _check(jax.random.normal(k4, (2, 256), dtype=jnp.float32), 96, 32)

    print("KERNEL_OK")
</pallas_src>

<mosaic_0001>
module attributes {stable_mosaic.version = 11 : i64} {
  func.func @_chunk_sumsq_kernel(%arg0: i32, %arg1: memref<1x32x16xf32, #tpu.memory_space<vmem>>, %arg2: memref<1x32xf32, #tpu.memory_space<vmem>>) attributes {dimension_semantics = [#tpu.dimension_semantics<parallel>], iteration_bounds = array<i64: 1>, scalar_prefetch = 0 : i64, scratch_operands = 0 : i64, tpu.core_type = #tpu.core_type<tc>, window_params = [{transform_indices = @transform_0, window_bounds = array<i64: 1, 32, 16>}, {transform_indices = @transform_1, window_bounds = array<i64: 1, 32>}]} {
    %c0 = arith.constant 0 : index
    %c0_0 = arith.constant 0 : index
    %c0_1 = arith.constant 0 : index
    %0 = vector.load %arg1[%c0, %c0_0, %c0_1] : memref<1x32x16xf32, #tpu.memory_space<vmem>>, vector<1x32x16xf32>
    %1 = arith.mulf %0, %0 : vector<1x32x16xf32>
    %cst = arith.constant dense<0.000000e+00> : vector<1x32xf32>
    %2 = vector.multi_reduction <add>, %1, %cst [2] : vector<1x32x16xf32> to vector<1x32xf32>
    %c0_2 = arith.constant 0 : index
    %c0_3 = arith.constant 0 : index
    %3 = vector.load %arg2[%c0_2, %c0_3] : memref<1x32xf32, #tpu.memory_space<vmem>>, vector<1x32xf32>
    tpu.vector_store %arg2[%c0_2, %c0_3], %2 {strides = array<i32>} : memref<1x32xf32, #tpu.memory_space<vmem>>, vector<1x32xf32>,
    return
  }
  func.func @transform_0(%arg0: i32) -> (i32, i32, i32) {
    %c0_i32 = arith.constant 0 : i32
    %c0_i32_0 = arith.constant 0 : i32
    %c0_i32_1 = arith.constant 0 : i32
    return %c0_i32, %arg0, %c0_i32_0 : i32, i32, i32
  }
  func.func @transform_1(%arg0: i32) -> (i32, i32) {
    %c0_i32 = arith.constant 0 : i32
    %c0_i32_0 = arith.constant 0 : i32
    return %c0_i32, %arg0 : i32, i32
  }
}

</mosaic_0001>

<bundles_post_ra>
// kernel: squeeze.1
= control target key start
LH: loop header
LB: loop body
LE: loop exit
PB: predicated region body
PF: predicated region fallthrough
CT: control target
= control target key end

     0   :  { %vm7_vm0 = vcmask 130048   ;;  %s39_s0 = inlined_call_operand.vmem [shape: f32[32], index: 0, kind: input, shape index: {}]   ;;  %s40_s1 = inlined_call_operand.vmem [shape: f32[2,16], index: 1, kind: output, shape index: {}]  }
   0x1   :  { %v4_v0 = vld [vmem:[%s39_s0] sm:$0x1]  ;;  %s22_s0 = smov 112  }
   0x2   :  { %5 = vst [vmem:[#allocation1] sm:$0x1] %v4_v0 }
   0x9   :  { %v9_v1 = vld [vmem:[#allocation1] sm:$0x1]  }
   0xa   :  { %v6_v2 = vld [vmem:[#allocation1] sm:$0x1]   ;;  %10 = vrot.lane.b32.xlu0 %v9_v1, %s22_s0 }
   0xb   :  { %8 = vst.msk [vmem:[#allocation0] sm:$0x1] %vm7_vm0, %v6_v2  }
  0x7c   :  { %v11_v3 = vpop.permute.xlu0 %10  }
  0x7d   :  { %14 = vst.msk [vmem:[#allocation0 + $0x1] sm:$0x1] %vm7_vm0, %v11_v3  }
  0x84   :  { %v18_v4 = vld [vmem:[#allocation0] sm:$0x3] }
  0x85   :  { %20 = vst [vmem:[%s40_s1] sm:$0x3] %v18_v4 }

// kernel: mul.5
= control target key start
LH: loop header
LB: loop body
LE: loop exit
PB: predicated region body
PF: predicated region fallthrough
CT: control target
= control target key end

     0   :  { %s34_s0 = inlined_call_operand.vmem [shape: f32[2,32], index: 0, kind: input, shape index: {}, may-alias: {0,1}]   ;;  %s35_s1 = inlined_call_operand.vmem [shape: f32[2,32], index: 1, kind: input, shape index: {}, may-alias: {0,1}]   ;;  %s36_s2 = inlined_call_operand.vmem [shape: f32[2,32], index: 2, kind: output, shape index: {}]  }
   0x1   :  { %v3_v0 = vld [vmem:[%s34_s0] sm:$0x3] }
   0x2   :  { %v4_v1 = vld [vmem:[%s35_s1] sm:$0x3] }
   0x3   :  { %v7_v2 = vmul.f32 %v4_v1, %v3_v0 }
   0x5   :  { %9 = vst [vmem:[%s36_s2] sm:$0x3] %v7_v2 }

// kernel: engry_encoder_forward.1
= control target key start
LH: loop header
LB: loop body
LE: loop exit
PB: predicated region body
PF: predicated region fallthrough
CT: control target
= control target key end

     0   :  { %vm16_vm0 = vcmask 130048   ;;  %v33_v12 = vlaneseq  ;;  %vm44_vm1 = vcmask 130112   ;;  %vm51_vm2 = vcmask 195712   ;;  %s92_s0 = inlined_call_operand.vmem [shape: f32[1,32,16], index: 0, kind: input, shape index: {}]   ;;  %s93_s1 = inlined_call_operand.vmem [shape: f32[1,32], index: 1, kind: output, shape index: {}]  }
   0x1   :  { %v8_v0 = vld [vmem:[%s92_s0] sm:$0xff]  ;;  %v10_v1 = vld [vmem:[%s92_s0 + $0x10] sm:$0xff]  ;;  %v9_v2 = vld [vmem:[%s92_s0 + $0x8] sm:$0xff]  ;;  %vm58_vm3 = vcmask 261312   ;;  %vm61_vm4 = vcmask 253952  }
   0x2   :  { %v12_v3 = vmul.f32 %v8_v0, %v8_v0  ;;  %v14_v4 = vmul.f32 %v10_v1, %v10_v1  ;;  %v13_v5 = vmul.f32 %v9_v2, %v9_v2  ;;  %v11_v6 = vld [vmem:[%s92_s0 + $0x18] sm:$0xff]  ;;  %v34_v13 = vand.u32 127, %v33_v12 }
   0x3   :  { %v15_v7 = vmul.f32 %v11_v6, %v11_v6  ;;  %v36_v14 = vshrl.u32 %v33_v12, 7 }
   0x4   :  { %v17_v8 = vsel %vm16_vm0, %v12_v3, 0.0  ;;  %v23_v9 = vsel %vm16_vm0, %v14_v4, 0.0  ;;  %v20_v10 = vsel %vm16_vm0, %v13_v5, 0.0  ;;  %v39_v15 = vadd.s32 4294967288, %v34_v13 }
   0x5   :  { %18 = vadd.xlane.f32.xlu0 %v17_v8  ;;  %24 = vadd.xlane.f32.xlu1 %v23_v9  ;;  %v26_v11 = vsel %vm16_vm0, %v15_v7, 0.0  ;;  %v53_v16 = vadd.s32 4294967272, %v34_v13  ;;  %v46_v17 = vadd.s32 4294967280, %v34_v13  ;;  %v37_v20 = vsub.s32 %v34_v13, %v36_v14 }
   0x6   :  { %v42_v21 = vsub.s32 %v39_v15, %v36_v14 }
   0x7   :  { %v56_v22 = vsub.s32 %v53_v16, %v36_v14  ;;  %v49_v23 = vsub.s32 %v46_v17, %v36_v14 }
   0x9   :  { %21 = vadd.xlane.f32.xlu0 %v20_v10  ;;  %27 = vadd.xlane.f32.xlu1 %v26_v11 }
  0x92   :  { %v19_v18 = vpop.xlane.xlu0 %18  ;;  %v25_v19 = vpop.xlane.xlu1 %24 }
  0x93   :  { %v38_v26 = vrot.slane %v19_v18, %v37_v20  ;;  %v50_v29 = vrot.slane %v25_v19, %v49_v23 }
  0x96   :  { %v22_v24 = vpop.xlane.xlu0 %21  ;;  %v28_v25 = vpop.xlane.xlu1 %27 }
  0x97   :  { %v43_v27 = vrot.slane %v22_v24, %v42_v21  ;;  %v57_v28 = vrot.slane %v28_v25, %v56_v22 }
  0x99   :  { %v45_v30 = vsel %vm44_vm1, %v43_v27, %v38_v26 }
  0x9a   :  { %v52_v31 = vsel %vm51_vm2, %v50_v29, %v45_v30 }
  0x9b   :  { %v59_v32 = vsel %vm58_vm3, %v57_v28, %v52_v31 }
  0x9c   :  { %62 = vst.msk [vmem:[%s93_s1] sm:$0x1] %vm61_vm4, %v59_v32 }

</bundles_post_ra>
